<compile_context>
chip_gen: v7x
topology: tpu7x:2x2x1
jax: 0.10.0
libtpu: 0.0.40
codegen_flags: <defaults>
</compile_context>

<pallas_src>
import functools

import jax
import jax.numpy as jnp
from jax.experimental import pallas as pl
from jax.experimental.pallas import tpu as pltpu

_TARGET_BLOCK_BYTES = 4 * 1024 * 1024  # ~4 MiB blocks; roofline saturates here.
_LANE_CANDIDATES = (2048, 1024, 512, 256, 128)


def _h_swish_kernel(x_ref, o_ref, *, compute_dtype):
    x = x_ref[...].astype(compute_dtype)
    # h_sigmoid(x) = relu6(x + 3) / 6 ; h_swish(x) = x * h_sigmoid(x)
    hs = jnp.clip(x + 3.0, 0.0, 6.0) / 6.0
    o_ref[...] = (x * hs).astype(o_ref.dtype)


def _h_swish_jnp(x):
    return x * (jnp.clip(x + 3.0, 0.0, 6.0) / 6.0)


def _is_v5_device() -> bool:
    try:
        return "v5" in jax.devices()[0].device_kind.lower()
    except Exception:  # conservative default: promote to f32
        return True


def _pick_lane(aligned_total: int) -> int:
    for cand in _LANE_CANDIDATES:
        if aligned_total % cand == 0:
            return cand
    return 128  # unreachable: aligned_total is always a multiple of 128


def _pick_tile_rows(rows: int, sub: int, target_rows: int) -> int:
    """Rows per block: a multiple of `sub` (or the full extent when tiny),
    sized near `target_rows`, preferring an EVEN grid-step count (balances
    v7x's two TensorCores) and >=4 steps for arrays that would otherwise be a
    single block (so input DMA of step i+1 overlaps step i's compute)."""
    if rows <= sub:
        return rows  # single block, rows dim equals full array extent
    target_rows = max(sub, min(target_rows, rows))
    if rows <= target_rows:
        if rows >= 4 * sub:
            target_rows = pl.cdiv(rows, 4)
        elif rows >= 2 * sub:
            target_rows = pl.cdiv(rows, 2)
        else:
            return sub  # 2 steps: one full sub-aligned block + one masked tail
    cand = max(sub, (target_rows // sub) * sub)
    # Small bidirectional search for an even step count near the target size.
    for delta in range(0, 9):
        for c in (cand + delta * sub, cand - delta * sub):
            if sub <= c < rows and pl.cdiv(rows, c) % 2 == 0:
                return c
    return cand


def h_swish(x: jax.Array, *, donate: bool = False) -> jax.Array:
    """Elementwise h_swish on an arbitrarily-shaped float array (NCHW expected)."""
    orig_shape = x.shape
    dtype = x.dtype
    if not jnp.issubdtype(dtype, jnp.floating):
        raise TypeError(f"h_swish supports floating dtypes only, got {dtype}")

    total = int(x.size)
    if total == 0:
        return x

    # Compute dtype: native bf16/f16 on v6e/v7x; promote only on v5 chips.
    if dtype in (jnp.bfloat16, jnp.float16) and _is_v5_device():
        compute_dtype = jnp.float32
    else:
        compute_dtype = dtype

    x_flat = jnp.ravel(x)
    aligned = (total // 128) * 128

    if aligned == 0:
        # Entire array is smaller than one lane row: plain jnp is optimal.
        return _h_swish_jnp(x_flat.astype(compute_dtype)).astype(dtype).reshape(orig_shape)

    # ---- lane-dense 2-D slab over the 128-aligned prefix ----
    head = x_flat if aligned == total else x_flat[:aligned]
    lane = _pick_lane(aligned)
    rows = aligned // lane
    head2d = head.reshape(rows, lane)

    itemsize = jnp.dtype(dtype).itemsize
    sub = 8 * max(1, 4 // itemsize)          # sublane multiple: 8 f32, 16 bf16
    row_bytes = lane * itemsize
    target_rows = max(1, _TARGET_BLOCK_BYTES // row_bytes)
    tile_rows = _pick_tile_rows(rows, sub, target_rows)
    grid = (pl.cdiv(rows, tile_rows),)

    kernel = functools.partial(_h_swish_kernel, compute_dtype=compute_dtype)

    out2d = pl.pallas_call(
        kernel,
        out_shape=jax.ShapeDtypeStruct((rows, lane), dtype),
        grid=grid,
        in_specs=[pl.BlockSpec((tile_rows, lane), lambda i: (i, 0))],
        out_specs=pl.BlockSpec((tile_rows, lane), lambda i: (i, 0)),
        input_output_aliases=({0: 0} if donate else {}),
        compiler_params=pltpu.CompilerParams(
            dimension_semantics=("parallel",),
            vmem_limit_bytes=32 * 1024 * 1024,
        ),
    )(head2d)

    if aligned == total:
        return out2d.reshape(orig_shape)

    # Ragged tail (<128 elements): patch with plain jnp, no whole-array pad/strip.
    tail = x_flat[aligned:]
    tail_out = _h_swish_jnp(tail.astype(compute_dtype)).astype(dtype)
    return jnp.concatenate([out2d.reshape(-1), tail_out]).reshape(orig_shape)


if __name__ == "__main__":
    key = jax.random.PRNGKey(0)

    # Main check: NCHW activation, 128-aligned element count (common path).
    x = jax.random.normal(key, (2, 4, 16, 16), dtype=jnp.float32) * 4.0
    out = jax.block_until_ready(h_swish(x))
    ref = _h_swish_jnp(x)
    assert out.shape == x.shape and out.dtype == x.dtype
    assert jnp.allclose(out, ref, atol=1e-6, rtol=1e-6), "mismatch vs reference"

    # Ragged check: total % 128 != 0 exercises the prefix + jnp-tail path.
    x2 = jax.random.normal(jax.random.PRNGKey(0), (2, 3, 37), dtype=jnp.float32) * 4.0
    out2 = jax.block_until_ready(h_swish(x2))
    ref2 = _h_swish_jnp(x2)
    assert out2.shape == x2.shape and out2.dtype == x2.dtype
    assert jnp.allclose(out2, ref2, atol=1e-6, rtol=1e-6), "ragged mismatch vs reference"

    print("KERNEL_OK")
</pallas_src>

<mosaic_0001>
module attributes {stable_mosaic.version = 11 : i64} {
  func.func @_h_swish_kernel(%arg0: i32, %arg1: memref<1x2048xf32, #tpu.memory_space<vmem>>, %arg2: memref<1x2048xf32, #tpu.memory_space<vmem>>) attributes {dimension_semantics = [#tpu.dimension_semantics<parallel>], iteration_bounds = array<i64: 1>, scalar_prefetch = 0 : i64, scratch_operands = 0 : i64, tpu.core_type = #tpu.core_type<tc>, window_params = [{transform_indices = @transform_0, window_bounds = array<i64: 1, 2048>}, {transform_indices = @transform_1, window_bounds = array<i64: 1, 2048>}]} {
    %c0 = arith.constant 0 : index
    %c0_0 = arith.constant 0 : index
    %0 = vector.load %arg1[%c0, %c0_0] : memref<1x2048xf32, #tpu.memory_space<vmem>>, vector<1x2048xf32>
    %cst = arith.constant 3.000000e+00 : f32
    %1 = vector.broadcast %cst : f32 to vector<1x2048xf32>
    %2 = arith.addf %0, %1 : vector<1x2048xf32>
    %cst_1 = arith.constant 0.000000e+00 : f32
    %cst_2 = arith.constant 6.000000e+00 : f32
    %3 = vector.broadcast %cst_1 : f32 to vector<1x2048xf32>
    %4 = arith.maximumf %3, %2 : vector<1x2048xf32>
    %5 = vector.broadcast %cst_2 : f32 to vector<1x2048xf32>
    %6 = arith.minimumf %5, %4 : vector<1x2048xf32>
    %cst_3 = arith.constant 6.000000e+00 : f32
    %7 = vector.broadcast %cst_3 : f32 to vector<1x2048xf32>
    %8 = arith.divf %6, %7 : vector<1x2048xf32>
    %9 = arith.mulf %0, %8 : vector<1x2048xf32>
    %c0_4 = arith.constant 0 : index
    %c0_5 = arith.constant 0 : index
    %10 = vector.load %arg2[%c0_4, %c0_5] : memref<1x2048xf32, #tpu.memory_space<vmem>>, vector<1x2048xf32>
    tpu.vector_store %arg2[%c0_4, %c0_5], %9 {strides = array<i32>} : memref<1x2048xf32, #tpu.memory_space<vmem>>, vector<1x2048xf32>,
    return
  }
  func.func @transform_0(%arg0: i32) -> (i32, i32) {
    %c0_i32 = arith.constant 0 : i32
    %c0_i32_0 = arith.constant 0 : i32
    return %arg0, %c0_i32 : i32, i32
  }
  func.func @transform_1(%arg0: i32) -> (i32, i32) {
    %c0_i32 = arith.constant 0 : i32
    %c0_i32_0 = arith.constant 0 : i32
    return %arg0, %c0_i32 : i32, i32
  }
}

</mosaic_0001>

<bundles_post_ra>
// kernel: tpu_custom_call.1
= control target key start
LH: loop header
LB: loop body
LE: loop exit
PB: predicated region body
PF: predicated region fallthrough
CT: control target
= control target key end

     0   :  { %6 = vsyncpa [#allocation3], 0  ;;  %s137_s0 = inlined_call_operand.hbm [shape: f32[1,2048], index: 0, kind: input, shape index: {}]   ;;  %s138_s1 = inlined_call_operand.hbm [shape: f32[1,2048], index: 1, kind: output, shape index: {}]  }
   0x1   :  { %7 = vsyncpa [#allocation4], 0  ;;  %s101_s6 = smov [#allocation2]   ;;  %s53_s10 = scalar_lea.hbm %s137_s0, 256 }
   0x2   :  { %s14_s7 = sshll.u32 %s101_s6, 4  ;;  %p54_p0 = scmp.ne.s32.totalorder %s137_s0, %s53_s10  ;;  %s15_s7 = int_to_ptr.vmem [resolvable:$true] %s14_s7 }
   0x3   :  { %p57_p1 = scmp.lt.u32.totalorder %s53_s10, %s137_s0 }
   0x5   :  { %p59_p2 = pnand %p57_p1, %p54_p0 }
   0x7   :  { %62 = shalt.err (!%p59_p2)
}
   0x8   :  { %s63_s15 = scalar_lea.vmem %s15_s7, 256  ;;  %p68_p4 = scmp.lt.s32.totalorder %s15_s7, %s15_s7 }
   0x9   :  { %p64_p3 = scmp.ne.s32.totalorder %s15_s7, %s63_s15  ;;  %p69_p5 = scmp.lt.s32.totalorder %s63_s15, %s63_s15 }
   0xb   :  { %p70_p6 = por %p69_p5, %p68_p4 }
   0xd   :  { %p71_p7 = pnand %p70_p6, %p64_p3 }
   0xf   :  { %74 = shalt.err (!%p71_p7)
}
  0x10   :  { %17 = dma.hbm_to_vmem [thread:$0]  %s137_s0, 256, %s15_s7, [#allocation3]  }
  0x11   :  { %97 = dma.done.wait [#allocation3], 256  }
  0x12   :  { %98 = vsyncadd [#allocation3], 4294967040  ;;  %v21_v0 = vld [vmem:[#allocation2] sm:$0xff]  ;;  %v22_v1 = vld [vmem:[#allocation2 + $0x8] sm:$0xff]  ;;  %s102_s18 = smov [#allocation5]  }
  0x13   :  { %v23_v2 = vadd.f32 3.0, %v21_v0  ;;  %v24_v3 = vadd.f32 3.0, %v22_v1  ;;  %s42_s19 = sshll.u32 %s102_s18, 4  ;;  %s43_s19 = int_to_ptr.vmem [resolvable:$true] %s42_s19 }
  0x14   :  { %s75_s0 = scalar_lea.vmem %s43_s19, 256  ;;  %p80_p9 = scmp.lt.s32.totalorder %s43_s19, %s43_s19 }
  0x15   :  { %v25_v4 = vmax.f32 %v23_v2, 0.0  ;;  %v26_v5 = vmax.f32 %v24_v3, 0.0  ;;  %p76_p8 = scmp.ne.s32.totalorder %s43_s19, %s75_s0  ;;  %p81_p10 = scmp.lt.s32.totalorder %s75_s0, %s75_s0 }
  0x17   :  { %v27_v6 = vmin.f32 %v25_v4, 6.0  ;;  %v28_v7 = vmin.f32 %v26_v5, 6.0  ;;  %p82_p11 = por %p81_p10, %p80_p9 }
  0x19   :  { %v30_v8 = vmul.f32 0.16666667, %v27_v6  ;;  %v31_v9 = vmul.f32 0.16666667, %v28_v7  ;;  %p83_p12 = pnand %p82_p11, %p76_p8 }
  0x1b   :  { %v32_v10 = vmul.f32 %v30_v8, %v21_v0  ;;  %v33_v11 = vmul.f32 %v31_v9, %v22_v1 }
  0x1d   :  { %34 = vst [vmem:[#allocation5] sm:$0xff] %v32_v10  ;;  %35 = vst [vmem:[#allocation5 + $0x8] sm:$0xff] %v33_v11 }
  0x1e   :  { %86 = shalt.err (!%p83_p12)
}
  0x1f   :  { %s87_s22 = scalar_lea.hbm %s138_s1, 256 }
  0x20   :  { %p88_p13 = scmp.ne.s32.totalorder %s138_s1, %s87_s22  ;;  %p91_p0 = scmp.lt.u32.totalorder %s87_s22, %s138_s1 }
  0x22   :  { %p93_p1 = pnand %p91_p0, %p88_p13 }
  0x24   :  { %96 = shalt.err (!%p93_p1)
}
  0x25   :  { %45 = dma.vmem_to_hbm [thread:$0]  %s43_s19, 256, %s138_s1, [#allocation4]  }
  0x26   :  { %99 = dma.done.wait [#allocation4], 256  }
  0x27   :  { %100 = vsyncadd [#allocation4], 4294967040 }
  0x28   :  { %49 = vsyncpa [#allocation3], 1 }
  0x29   :  { %50 = vsyncpa [#allocation4], 1 }

</bundles_post_ra>
